<compile_context>
chip_gen: v7x
topology: tpu7x:2x2x1
jax: 0.10.0
libtpu: 0.0.40
codegen_flags: <defaults>
</compile_context>

<pallas_src>
import functools

import jax
import jax.numpy as jnp
from jax.experimental import pallas as pl
from jax.experimental.pallas import tpu as pltpu


def _ce_kernel(pred_ref, targ_ref, out_ref, *, hw, tile_hw, c,
               shards, tiles_per_shard, may_mask):
    i = pl.program_id(0)          # batch * shard
    j = pl.program_id(1)          # pixel tile within shard

    @pl.when(j == 0)
    def _init():
        out_ref[...] = jnp.zeros_like(out_ref)

    x = pred_ref[...].astype(jnp.float32)        # (1, C, tile_hw)
    tgt = targ_ref[...]                          # (1, 1, tile_hw) int32

    # log-sum-exp over the class (sublane) axis: no per-element divide.
    m = jnp.max(x, axis=1, keepdims=True)                              # (1, 1, tile_hw)
    lse = m + jnp.log(jnp.sum(jnp.exp(x - m), axis=1, keepdims=True))  # (1, 1, tile_hw)

    # Select the target-class logit with a one-hot compare (no sublane gather).
    # Iota is (1, C, 1) and broadcasts along lanes inside the compare.
    # NOTE: out-of-range target ids yield x_tgt = 0 (loss = lse) instead of erroring.
    cls = jax.lax.broadcasted_iota(jnp.int32, (1, c, 1), 1)
    x_tgt = jnp.sum(jnp.where(cls == tgt, x, 0.0), axis=1, keepdims=True)

    nll = lse - x_tgt                                                  # (1, 1, tile_hw)

    if not may_mask:
        # Every tile is full: plain lane-dense accumulate.
        out_ref[...] += nll
    else:
        # Global pixel-tile index for this grid point.
        if shards == 1:
            g = j
        else:
            g = (i % shards) * tiles_per_shard + j
        tile_start = g * tile_hw
        full = tile_start + tile_hw <= hw

        @pl.when(full)
        def _acc_full():
            out_ref[...] += nll

        @pl.when(jnp.logical_not(full))
        def _acc_tail():
            # Ragged / duplicated tile: mask out pixels past the true H*W
            # (jnp.where safely discards any garbage/NaN in OOB lanes).
            pix = tile_start + jax.lax.broadcasted_iota(jnp.int32, (1, 1, tile_hw), 2)
            out_ref[...] += jnp.where(pix < hw, nll, 0.0)


def cross_entropy_loss(predict, target, *, max_block_bytes=4 * 1024 * 1024):
    """predict: (N, C, H, W) float logits; target: (N, H, W) int class ids."""
    n, c, h, w = predict.shape
    assert target.shape == (n, h, w)
    hw = h * w
    itemsize = jnp.dtype(predict.dtype).itemsize

    # Lane tile: multiple of 128, sized from the real element size so one predict
    # block is ~max_block_bytes; never larger than the in-bounds 128-multiple of hw.
    if hw >= 128:
        lanes_cap = (hw // 128) * 128
        tile_hw = max(128, min((max_block_bytes // (itemsize * c)) // 128 * 128,
                               lanes_cap))
    else:
        tile_hw = hw  # block equals the full (tiny) lane extent
    num_tiles = pl.cdiv(hw, tile_hw)

    # Megacore (v7x): if N < 2, shard the pixel-tile axis across 2 parallel slots.
    shards = 2 if (n < 2 and num_tiles >= 2) else 1
    tiles_per_shard = pl.cdiv(num_tiles, shards)

    ragged_tail = (hw % tile_hw) != 0
    oob_tiles = shards * tiles_per_shard > num_tiles
    may_mask = ragged_tail or oob_tiles

    # No transpose, no pad: view as (N, C, H*W) so classes sit on sublanes.
    pred3 = predict.reshape(n, c, hw)
    targ3 = target.astype(jnp.int32).reshape(n, 1, hw)

    if shards == 1:
        pred_map = lambda i, j: (i, 0, j)
        targ_map = lambda i, j: (i, 0, j)
    else:
        def _tile(i, j):
            # Clamp so a shard's padded trailing tiles never index out of bounds;
            # their contribution is fully masked to zero in the kernel.
            return jnp.minimum((i % shards) * tiles_per_shard + j, num_tiles - 1)
        pred_map = lambda i, j: (i // shards, 0, _tile(i, j))
        targ_map = lambda i, j: (i // shards, 0, _tile(i, j))

    # Explicit VMEM budget (v7x has only 64 MiB physical): 2x sublane-padded pred
    # blocks + 2x (1->8)-padded target blocks + 2x out blocks + ~2 full f32 temps.
    def _rup(a, m):
        return (a + m - 1) // m * m
    c_pad_in = _rup(c, max(8, 32 // itemsize))
    pred_blk = c_pad_in * tile_hw * itemsize
    targ_blk = 8 * tile_hw * 4
    out_blk = 8 * tile_hw * 4
    temps = 2 * _rup(c, 8) * tile_hw * 4
    footprint = 2 * pred_blk + 2 * targ_blk + 2 * out_blk + temps
    vmem_limit = int(min(max(footprint + 8 * 1024 * 1024, 32 * 1024 * 1024),
                         56 * 1024 * 1024))

    grid = (n * shards, tiles_per_shard)
    partials = pl.pallas_call(
        functools.partial(_ce_kernel, hw=hw, tile_hw=tile_hw, c=c,
                          shards=shards, tiles_per_shard=tiles_per_shard,
                          may_mask=may_mask),
        out_shape=jax.ShapeDtypeStruct((n * shards, 1, tile_hw), jnp.float32),
        grid_spec=pltpu.PrefetchScalarGridSpec(
            num_scalar_prefetch=0,
            grid=grid,
            in_specs=[
                pl.BlockSpec((1, c, tile_hw), pred_map),
                pl.BlockSpec((1, 1, tile_hw), targ_map),
            ],
            out_specs=pl.BlockSpec((1, 1, tile_hw), lambda i, j: (i, 0, 0)),
        ),
        compiler_params=pltpu.CompilerParams(
            dimension_semantics=("parallel", "arbitrary"),
            vmem_limit_bytes=vmem_limit,
        ),
    )(pred3, targ3)

    # Mean over all N*H*W pixels (CrossEntropyLoss default 'mean', no ignore_index).
    return jnp.sum(partials) / jnp.float32(n * hw)


def task_loss(predict, target, losses=("cross_entropy",)):
    """TaskLoss.forward with its default configuration (losses=['cross_entropy'])."""
    total = jnp.float32(0.0)
    if "cross_entropy" in losses:
        total = total + cross_entropy_loss(predict, target)
    # TODO(synk): 'dice' branch (DiceLoss/BinaryDiceLoss) not implemented in Pallas;
    # TaskLoss defaults do not include it.
    return total


def _reference(predict, target):
    # Pure-JAX reference of TaskLoss defaults: nn.CrossEntropyLoss(reduction='mean').
    logits = predict.astype(jnp.float32)
    logp = jax.nn.log_softmax(logits, axis=1)
    onehot = jax.nn.one_hot(target, logits.shape[1], axis=1, dtype=jnp.float32)
    nll = -jnp.sum(onehot * logp, axis=1)
    return jnp.mean(nll)


if __name__ == "__main__":
    key = jax.random.PRNGKey(0)
    k1, k2 = jax.random.split(key)
    num_classes = 13                      # TaskLoss default num_classes
    predict = jax.random.normal(k1, (2, num_classes, 16, 16), dtype=jnp.float32)
    target = jax.random.randint(k2, (2, 16, 16), 0, num_classes, dtype=jnp.int32)

    loss = jax.block_until_ready(task_loss(predict, target))
    ref = jax.block_until_ready(_reference(predict, target))

    assert jnp.abs(loss - ref) < 1e-4, (loss, ref)
    print("KERNEL_OK")
</pallas_src>

<mosaic_0001>
module attributes {stable_mosaic.version = 11 : i64} {
  func.func @_ce_kernel(%arg0: i32, %arg1: i32, %arg2: memref<1x13x256xf32, #tpu.memory_space<vmem>>, %arg3: memref<1x1x256xi32, #tpu.memory_space<vmem>>, %arg4: memref<1x1x256xf32, #tpu.memory_space<vmem>>) attributes {dimension_semantics = [#tpu.dimension_semantics<parallel>, #tpu.dimension_semantics<arbitrary>], iteration_bounds = array<i64: 2, 1>, scalar_prefetch = 0 : i64, scratch_operands = 0 : i64, tpu.core_type = #tpu.core_type<tc>, window_params = [{transform_indices = @transform_0, window_bounds = array<i64: 1, 13, 256>}, {transform_indices = @transform_1, window_bounds = array<i64: 1, 1, 256>}, {transform_indices = @transform_2, window_bounds = array<i64: 1, 1, 256>}]} {
    %c0_i32 = arith.constant 0 : i32
    %0 = arith.cmpi eq, %arg1, %c0_i32 : i32
    %1 = arith.extui %0 : i1 to i32
    %c0_i32_0 = arith.constant 0 : i32
    %2 = arith.cmpi ne, %1, %c0_i32_0 : i32
    scf.if %2 {
      %cst_15 = arith.constant 0.000000e+00 : f32
      %26 = vector.broadcast %cst_15 : f32 to vector<1x1x256xf32>
      %c0_16 = arith.constant 0 : index
      %c0_17 = arith.constant 0 : index
      %c0_18 = arith.constant 0 : index
      %27 = vector.load %arg4[%c0_16, %c0_17, %c0_18] : memref<1x1x256xf32, #tpu.memory_space<vmem>>, vector<1x1x256xf32>
      tpu.vector_store %arg4[%c0_16, %c0_17, %c0_18], %26 {strides = array<i32>} : memref<1x1x256xf32, #tpu.memory_space<vmem>>, vector<1x1x256xf32>,
    } else {
    }
    %c0 = arith.constant 0 : index
    %c0_1 = arith.constant 0 : index
    %c0_2 = arith.constant 0 : index
    %3 = vector.load %arg2[%c0, %c0_1, %c0_2] : memref<1x13x256xf32, #tpu.memory_space<vmem>>, vector<1x13x256xf32>
    %c0_3 = arith.constant 0 : index
    %c0_4 = arith.constant 0 : index
    %c0_5 = arith.constant 0 : index
    %4 = vector.load %arg3[%c0_3, %c0_4, %c0_5] : memref<1x1x256xi32, #tpu.memory_space<vmem>>, vector<1x1x256xi32>
    %cst = arith.constant dense<0xFF800000> : vector<1x256xf32>
    %5 = vector.multi_reduction <maximumf>, %3, %cst [1] : vector<1x13x256xf32> to vector<1x256xf32>
    %6 = vector.shape_cast %5 : vector<1x256xf32> to vector<1x1x256xf32>
    %7 = vector.broadcast %6 : vector<1x1x256xf32> to vector<1x13x256xf32>
    %8 = arith.subf %3, %7 : vector<1x13x256xf32>
    %9 = math.exp %8 : vector<1x13x256xf32>
    %cst_6 = arith.constant dense<0.000000e+00> : vector<1x256xf32>
    %10 = vector.multi_reduction <add>, %9, %cst_6 [1] : vector<1x13x256xf32> to vector<1x256xf32>
    %11 = vector.shape_cast %10 : vector<1x256xf32> to vector<1x1x256xf32>
    %12 = math.log %11 : vector<1x1x256xf32>
    %13 = arith.addf %6, %12 : vector<1x1x256xf32>
    %14 = tpu.iota {dimensions = array<i32: 1>} : vector<1x13x1xi32>
    %15 = vector.broadcast %14 : vector<1x13x1xi32> to vector<1x13x256xi32>
    %16 = vector.broadcast %4 : vector<1x1x256xi32> to vector<1x13x256xi32>
    %17 = arith.cmpi eq, %15, %16 : vector<1x13x256xi32>
    %cst_7 = arith.constant 0.000000e+00 : f32
    %18 = vector.broadcast %cst_7 : f32 to vector<1x13x256xf32>
    %19 = arith.select %17, %3, %18 : vector<1x13x256xi1>, vector<1x13x256xf32>
    %cst_8 = arith.constant dense<0.000000e+00> : vector<1x256xf32>
    %20 = vector.multi_reduction <add>, %19, %cst_8 [1] : vector<1x13x256xf32> to vector<1x256xf32>
    %21 = vector.shape_cast %20 : vector<1x256xf32> to vector<1x1x256xf32>
    %22 = arith.subf %13, %21 : vector<1x1x256xf32>
    %c0_9 = arith.constant 0 : index
    %c0_10 = arith.constant 0 : index
    %c0_11 = arith.constant 0 : index
    %23 = vector.load %arg4[%c0_9, %c0_10, %c0_11] : memref<1x1x256xf32, #tpu.memory_space<vmem>>, vector<1x1x256xf32>
    %24 = arith.addf %23, %22 : vector<1x1x256xf32>
    %c0_12 = arith.constant 0 : index
    %c0_13 = arith.constant 0 : index
    %c0_14 = arith.constant 0 : index
    %25 = vector.load %arg4[%c0_12, %c0_13, %c0_14] : memref<1x1x256xf32, #tpu.memory_space<vmem>>, vector<1x1x256xf32>
    tpu.vector_store %arg4[%c0_12, %c0_13, %c0_14], %24 {strides = array<i32>} : memref<1x1x256xf32, #tpu.memory_space<vmem>>, vector<1x1x256xf32>,
    return
  }
  func.func @transform_0(%arg0: i32, %arg1: i32) -> (i32, i32, i32) {
    %c0_i32 = arith.constant 0 : i32
    %c0_i32_0 = arith.constant 0 : i32
    return %arg0, %c0_i32, %arg1 : i32, i32, i32
  }
  func.func @transform_1(%arg0: i32, %arg1: i32) -> (i32, i32, i32) {
    %c0_i32 = arith.constant 0 : i32
    %c0_i32_0 = arith.constant 0 : i32
    return %arg0, %c0_i32, %arg1 : i32, i32, i32
  }
  func.func @transform_2(%arg0: i32, %arg1: i32) -> (i32, i32, i32) {
    %c0_i32 = arith.constant 0 : i32
    %c0_i32_0 = arith.constant 0 : i32
    %c0_i32_1 = arith.constant 0 : i32
    return %arg0, %c0_i32, %c0_i32_0 : i32, i32, i32
  }
}

</mosaic_0001>

<bundles_post_ra>
// kernel: tpu_custom_call.1
= control target key start
LH: loop header
LB: loop body
LE: loop exit
PB: predicated region body
PF: predicated region fallthrough
CT: control target
= control target key end

     0   :  { %7 = vsyncpa [#allocation3], 0  ;;  %s777_s0 = inlined_call_operand.vmem [shape: f32[2,13,256], index: 0, kind: input, shape index: {}]   ;;  %s778_s1 = inlined_call_operand.vmem [shape: s32[2,1,256], index: 1, kind: input, shape index: {}]   ;;  %s779_s2 = inlined_call_operand.hbm [shape: f32[2,1,256], index: 2, kind: output, shape index: {}]  }
   0x1   :  { %9 = vsyncpa [#allocation3 + $0x1], 0  ;;  %s616_s9 = smov 0   ;;  %s618_s10 = smov 0  }
   0x2   :  { %s620_s11 = smov 0   ;;  %s622_s12 = smov 0  }
   0x3   :  { %s624_s13 = smov 0   ;;  %s626_s14 = smov 0  }
   0x4 LB: > { %s433_s15 = sadd.s32 4294967295, %s596_s14   ;;  %s434_s16 = sadd.s32 4294967294, %s596_s14   ;;  %s596_s14 = sphi %s626_s14, %s15_s14   ;;  %s592_s13 = sphi %s624_s13, %s788_s13   ;;  %s588_s12 = sphi %s622_s12, %s787_s12   ;;  %s584_s11 = sphi %s620_s11, %s786_s11   ;;  %s580_s10 = sphi %s618_s10, %s785_s10   ;;  %s576_s9 = sphi %s616_s9, %s784_s9  }
   0x5   : > { %s27_s17 = sadd.s32 1, %s592_s13  ;;  %s90_s18 = sadd.s32 1, %s584_s11 }
   0x6   : > { %p29_p0 = scmp.ge.s32.totalorder %s27_s17, 2  ;;  %p100_p1 = scmp.ne.s32.totalorder %s584_s11, %s580_s10 }
   0x7   : > { %p101_p2 = scmp.eq.s32.totalorder %s433_s15, 1  ;;  %p106_p3 = scmp.ne.s32.totalorder %s580_s10, %s576_s9 }
   0x8   : > { %s790_s17 = smov (%p29_p0, %s27_s17), 0  ;;  %p107_p5 = scmp.eq.s32.totalorder %s434_s16, 1 }
   0x9   : > { %p656_p4 = por %p101_p2, %p100_p1  ;;  %s87_s20 = ssub.s32 %s592_s13, %s790_s17 }
   0xa   : > { %p437_p6 = scmp.ge.s32.totalorder %s596_s14, 1  ;;  %p88_p7 = scmp.eq.s32.totalorder %s87_s20, 0 }
   0xb   : > { %p663_p8 = por %p107_p5, %p106_p3  ;;  %p150_p9 = scmp.lt.s32.totalorder %s596_s14, 3 }
   0xc   : > { %s669_s22 = scalar_select %p88_p7, %s584_s11, %s90_s18  }
   0xd   : > { %p151_p10 = pnand %p437_p6, %p150_p9 }
   0xe   : > { %s181_s23 = sand.u32 (!%p151_p10), 1, %s580_s10   ;;  %p185_p11 = scmp.lt.s32.totalorder (!%p151_p10), %s588_s12, 1  ;;  %v207_v0 = vlaneseq (!%p151_p10)  ;;  %v598_v2 = vmov (!%p151_p10), 0.0   ;;  %vm217_vm1 = vcmask (!%p151_p10), 1044480  }
   0xf   : > { %154 = sbr.rel (%p151_p10) target bundleno = 114 (0x72), region = 28  ;;  %s438_s24 = sshll.u32 (!%p151_p10), %s181_s23, 1 }
  0x10   : > { %vm675_vm0 = vcmp.lt.s32.totalorder (!%p151_p10), %v207_v0, 256  ;;  %s682_s26 = scalar_lea.vmem (!%p151_p10), [#allocation2], %s438_s24  ;;  %v694_v21 = vshrl.u32 (!%p151_p10), %v207_v0, 7  ;;  %s448_s7 = sshll.u32 (!%p151_p10), %s588_s12, 5 }
  0x11   : > { %211 = vst.msk [vmem:[%s682_s26] sm:$0x3] (!%p151_p10), %vm675_vm0, %v598_v2  ;;  %s345_s8 = sshll.u32 (!%p151_p10), %s682_s26, 4  ;;  %s725_s18 = scalar_lea.hbm (!%p151_p10), %s779_s2, %s448_s7  ;;  %s727_s8 = int_to_ptr.vmem [resolvable:$true] %s345_s8 }
  0x12   : > { %v273_v28 = vsub.s32 (!%p151_p10), 0, %v694_v21  ;;  %v277_v33 = vsub.s32 (!%p151_p10), 1, %v694_v21  ;;  %v270_v35 = vadd.s32 (!%p151_p10), 8, %v694_v21  ;;  %s331_s20 = scalar_lea.sflag (!%p151_p10), [#allocation3], %s181_s23  ;;  %s518_s24 = scalar_lea.vmem (!%p151_p10), %s727_s8, 32 }
  0x13   : > { %p519_p12 = scmp.ne.s32.totalorder (!%p151_p10), %s727_s8, %s518_s24 }
  0x15   : > { %p520_p13 = pnand (!%p151_p10), %p519_p12, %p656_p4 }
  0x16   : > { %s680_s25 = scalar_select %p185_p11, %s588_s12, 1 }
  0x17   : > { %p521_p0 = pneg %p520_p13  ;;  %s600_s12 = smov [#allocation2]  }
  0x18   : > { %s447_s27 = sshll.u32 %s680_s25, 5  ;;  %s441_s3 = sshll.u32 %s680_s25, 1 }
  0x19   : > { %s192_s30 = scalar_lea.vmem %s777_s0, %s447_s27  ;;  %s201_s6 = scalar_lea.vmem %s778_s1, %s441_s3 }
  0x1a   : > { %v212_v3 = vld [vmem:[%s192_s30] sm:$0xff]  ;;  %v213_v4 = vld [vmem:[%s192_s30 + $0x8] sm:$0xff]  ;;  %v214_v5 = vld [vmem:[%s192_s30 + $0x10] sm:$0x1f]  ;;  %s522_s25 = sshll.u32 %s600_s12, 4  ;;  %s523_s25 = int_to_ptr.vmem [resolvable:$false] %s522_s25 }
  0x1b   : > { %v215_v6 = vld [vmem:[%s192_s30 + $0x18] sm:$0x1f]  ;;  %v218_v7 = vsel %vm217_vm1, %v214_v5, -inf  ;;  %v216_v32 = vld [vmem:[%s201_s6] sm:$0x3]  ;;  %s524_s27 = scalar_lea.vmem %s523_s25, 64  ;;  %p525_p1 = scmp.lt.s32.totalorder %s727_s8, %s523_s25 }
  0x1c   : > { %v226_v8 = vsel %vm217_vm1, %v215_v6, -inf  ;;  %v219_v9 = vmax.f32 %v212_v3, %v218_v7  ;;  %v274_v36 = vrot.slane %v216_v32, %v273_v28  ;;  %v278_v37 = vrot.slane %v216_v32, %v277_v33  ;;  %v305_v32 = vld [vmem:[%s682_s26] sm:$0x3]  ;;  %p526_p2 = scmp.lt.s32.totalorder %s524_s27, %s518_s24 }
  0x1d   : > { %v227_v10 = vmax.f32 %v213_v4, %v226_v8 }
  0x1e   : > { %v220_v11 = vrot.slane %v219_v9, 4  ;;  %vm281_vm2 = vcmp.eq.s32.totalorder %v270_v35, %v274_v36  ;;  %vm282_vm3 = vcmp.eq.s32.totalorder %v270_v35, %v278_v37  ;;  %vm279_vm4 = vcmp.eq.s32.totalorder %v694_v21, %v274_v36  ;;  %p527_p3 = por %p526_p2, %p525_p1 }
  0x1f   : > { %v228_v12 = vrot.slane %v227_v10, 4  ;;  %v285_v38 = vsel %vm281_vm2, %v214_v5, 0.0  ;;  %vm280_vm5 = vcmp.eq.s32.totalorder %v694_v21, %v278_v37  ;;  %v286_v40 = vsel %vm282_vm3, %v215_v6, 0.0 }
  0x20   : > { %v221_v13 = vmax.f32 %v219_v9, %v220_v11  ;;  %v283_v43 = vsel %vm279_vm4, %v212_v3, 0.0  ;;  %v287_v44 = vsel %vm217_vm1, %v285_v38, 0.0  ;;  %v284_v47 = vsel %vm280_vm5, %v213_v4, 0.0  ;;  %p528_p5 = pnand %p527_p3, %p521_p0 }
  0x21   : > { %v229_v14 = vmax.f32 %v227_v10, %v228_v12  ;;  %v295_v48 = vsel %vm217_vm1, %v286_v40, 0.0  ;;  %v288_v52 = vadd.f32 %v287_v44, %v283_v43 }
  0x22   : > { %v222_v15 = vrot.slane %v221_v13, 2  ;;  %v296_v54 = vadd.f32 %v295_v48, %v284_v47 }
  0x23   : > { %v230_v16 = vrot.slane %v229_v14, 2  ;;  %v289_v58 = vrot.slane %v288_v52, 4 }
  0x24   : > { %v223_v17 = vmax.f32 %v221_v13, %v222_v15  ;;  %v297_v60 = vrot.slane %v296_v54, 4  ;;  %v599_v13 = vmov 1966171168  }
  0x25   : > { %v231_v18 = vmax.f32 %v229_v14, %v230_v16  ;;  %v290_v0 = vadd.f32 %v289_v58, %v288_v52  ;;  %v310_v14 = vunpack.c.l.s4 %v599_v13 }
  0x26   : > { %v224_v19 = vrot.slane %v223_v17, 1 }
  0x27   : > { %v232_v20 = vrot.slane %v231_v18, 1  ;;  %v291_v7 = vrot.slane %v290_v0, 2 }
  0x28   : > { %v696_v22 = vmax.f32 %v223_v17, %v224_v19 }
  0x29   : > { %v698_v23 = vmax.f32 %v231_v18, %v232_v20  ;;  %v292_v9 = vadd.f32 %v291_v7, %v290_v0 }
  0x2a   : > { %v234_v24 = vsub.f32 %v212_v3, %v696_v22  ;;  %v236_v26 = vsub.f32 %v214_v5, %v696_v22  ;;  %v298_v3 = vadd.f32 %v297_v60, %v296_v54 }
  0x2b   : > { %v235_v25 = vsub.f32 %v213_v4, %v698_v23  ;;  %v237_v27 = vsub.f32 %v215_v6, %v698_v23  ;;  %v293_v11 = vrot.slane %v292_v9, 1 }
  0x2c   : > { %v238_v29 = vmul.f32 1.442695, %v234_v24  ;;  %v242_v31 = vmul.f32 1.442695, %v236_v26  ;;  %v299_v8 = vrot.slane %v298_v3, 2  ;;  %v311_v24 = vunpack.c.0.s8 %v310_v14 }
  0x2d   : > { %v240_v30 = vmul.f32 1.442695, %v235_v25  ;;  %v244_v34 = vmul.f32 1.442695, %v237_v27  ;;  %v294_v18 = vadd.f32 %v293_v11, %v292_v9 }
  0x2e   : > { %506 = vpow2.f32 %v238_v29  ;;  %v300_v10 = vadd.f32 %v299_v8, %v298_v3  ;;  %v314_v29 = vsub.s32 %v311_v24, %v694_v21 }
  0x2f   : > { %508 = vpow2.f32 %v240_v30 }
  0x30   : > { %510 = vpow2.f32 %v242_v31  ;;  %v301_v12 = vrot.slane %v300_v10, 1 }
  0x31   : > { %512 = vpow2.f32 %v244_v34 }
  0x32   : > { %v302_v20 = vadd.f32 %v301_v12, %v300_v10 }
  0x38   : > { %v507_v39 = vpop.eup %506 }
  0x39   : > { %v509_v41 = vpop.eup %508 }
  0x3a   : > { %v511_v42 = vpop.eup %510 }
  0x3b   : > { %v513_v45 = vpop.eup %512  ;;  %v246_v46 = vsel %vm217_vm1, %v511_v42, 0.0 }
  0x3c   : > { %v247_v49 = vadd.f32 %v507_v39, %v246_v46  ;;  %v254_v50 = vsel %vm217_vm1, %v513_v45, 0.0 }
  0x3d   : > { %v255_v51 = vadd.f32 %v509_v41, %v254_v50 }
  0x3e   : > { %v248_v53 = vrot.slane %v247_v49, 4 }
  0x3f   : > { %v256_v55 = vrot.slane %v255_v51, 4 }
  0x40   : > { %v249_v56 = vadd.f32 %v248_v53, %v247_v49 }
  0x41   : > { %v257_v57 = vadd.f32 %v256_v55, %v255_v51 }
  0x42   : > { %v250_v59 = vrot.slane %v249_v56, 2 }
  0x43   : > { %v258_v61 = vrot.slane %v257_v57, 2 }
  0x44   : > { %v251_v62 = vadd.f32 %v250_v59, %v249_v56 }
  0x45   : > { %v259_v63 = vadd.f32 %v258_v61, %v257_v57 }
  0x46   : > { %v252_v2 = vrot.slane %v251_v62, 1 }
  0x47   : > { %v260_v4 = vrot.slane %v259_v63, 1 }
  0x48   : > { %v253_v5 = vadd.f32 %v252_v2, %v251_v62 }
  0x49   : > { %v261_v6 = vadd.f32 %v260_v4, %v259_v63 }
  0x4a   : > { %514 = vlog2.f32 %v253_v5 }
  0x4b   : > { %516 = vlog2.f32 %v261_v6 }
  0x54   : > { %v515_v15 = vpop.eup %514 }
  0x55   : > { %v517_v16 = vpop.eup %516  ;;  %v263_v17 = vmul.f32 0.6931472, %v515_v15 }
  0x56   : > { %v265_v19 = vmul.f32 0.6931472, %v517_v16 }
  0x57   : > { %v266_v25 = vadd.f32 %v263_v17, %v696_v22 }
  0x58   : > { %v267_v26 = vadd.f32 %v265_v19, %v698_v23 }
  0x59   : > { %v303_v27 = vsub.f32 %v266_v25, %v294_v18 }
  0x5a   : > { %v304_v28 = vsub.f32 %v267_v26, %v302_v20 }
  0x5c   : > { %v308_v30 = vcombine.low %v303_v27, %v304_v28 }
  0x5e   : > { %v315_v31 = vrot.slane %v308_v30, %v314_v29 }
  0x60   : > { %v322_v33 = vrot.slane %v315_v31, %v314_v29 }
  0x62   : > { %v324_v34 = vadd.f32 %v322_v33, %v305_v32 }
  0x64   : > { %329 = vst.msk [vmem:[%s682_s26] sm:$0x3] %vm675_vm0, %v324_v34 }
  0x65   : > { %531 = shalt.err (!%p528_p5)
}
  0x66   : > { %s532_s23 = scalar_lea.hbm %s725_s18, 32  ;;  %s536_s29 = scalar_lea.hbm %s779_s2, 64 }
  0x67   : > { %p533_p6 = scmp.ne.s32.totalorder %s725_s18, %s532_s23  ;;  %p537_p10 = scmp.lt.u32.totalorder %s725_s18, %s779_s2 }
  0x68   : > { %p538_p11 = scmp.lt.u32.totalorder %s536_s29, %s532_s23  ;;  %p540_p13 = scmp.lt.u32.totalorder %s532_s23, %s725_s18 }
  0x69   : > { %p534_p7 = pnand %p533_p6, %p656_p4 }
  0x6a   : > { %p539_p12 = por %p538_p11, %p537_p10 }
  0x6b   : > { %p535_p9 = pneg %p534_p7 }
  0x6c   : > { %p541_p0 = por %p540_p13, %p539_p12 }
  0x6e   : > { %p542_p1 = pnand %p541_p0, %p535_p9 }
  0x70   : > { %545 = shalt.err (!%p542_p1)
}
  0x71   : > { %449 = dma.vmem_to_hbm [thread:$0]  (%p656_p4), %s727_s8, 32, %s725_s18, %s331_s20  }
  0x72 PF: > { %p455_p2 = scmp.ge.s32.totalorder %s596_s14, 2  ;;  %s357_s4 = sand.u32 1, %s576_s9  }
  0x73   : > { %s358_s5 = scalar_lea.sflag [#allocation3], %s357_s4 }
  0x74   : > { %p452_p3 = pnand %p455_p2, %p663_p8 }
  0x76   : > { %571 = dma.done.wait (!%p452_p3), %s358_s5, 32  }
  0x77   : > { %573 = vsyncadd (!%p452_p3), %s358_s5, 4294967264  ;;  %s15_s14 = sadd.s32 1, %s596_s14   ;;  %s784_s9 = smov %s580_s10 }
  0x78   : > { %p12_p5 = scmp.ge.s32.totalorder %s15_s14, 4   ;;  %s785_s10 = smov %s584_s11 }
  0x79   : > { %s786_s11 = smov %s669_s22  ;;  %s787_s12 = smov %s592_s13 }
  0x7a   : > { %s788_s13 = smov %s790_s17  ;;  %14 = sbr.rel (!%p12_p5) target bundleno = 4 (0x4), region = 70 }
  0x81   :  { %363 = vsyncpa [#allocation3], 1 }
  0x82   :  { %365 = vsyncpa [#allocation3 + $0x1], 1 }

</bundles_post_ra>
